<compile_context>
chip_gen: v5e
topology: v5e:2x2
jax: 0.10.0
libtpu: 0.0.40
codegen_flags: <defaults>
</compile_context>

<pallas_src>
import functools

import jax
import jax.numpy as jnp
from jax import lax
from jax.experimental import pallas as pl
from jax.experimental.pallas import tpu as pltpu

_LANE = 128


# ----------------------------------------------------------------------------
# In-kernel helpers
# ----------------------------------------------------------------------------
def _col_sum_f32(x_ref, width):
    """Sum of x_ref[:, :width] along the lane axis -> (C, 1) float32.

    Two-stage reduction: VPU-add 128-lane, vreg-aligned ref slices into a
    (C, 128) partial, then a single cross-lane reduce.  The ragged tail
    (< 128 lanes, 128-aligned start) is reduced separately.
    """
    c = x_ref.shape[0]
    n_full = width // _LANE
    rem = width - n_full * _LANE
    total = jnp.zeros((c, 1), jnp.float32)

    if n_full > 0:
        def body(g, part):
            start = pl.multiple_of(g * _LANE, _LANE)
            return part + x_ref[:, pl.ds(start, _LANE)].astype(jnp.float32)

        init = jnp.zeros((c, _LANE), jnp.float32)
        if n_full <= 16:              # short trip count: full unroll
            part = init
            for g in range(n_full):
                part = body(g, part)
        else:
            part = lax.fori_loop(0, n_full, body, init, unroll=8)
        total = total + jnp.sum(part, axis=1, keepdims=True)

    if rem > 0:
        tail = x_ref[:, n_full * _LANE:width].astype(jnp.float32)
        total = total + jnp.sum(tail, axis=1, keepdims=True)
    return total


def _channel_conv_sigmoid(mean, w_ref, k, p):
    """sigmoid(Conv1d(1, 1, k, padding=p, bias=False)(mean)) over channels.

    mean: (C, 1) float32 column.  Implemented as k shifted adds of the
    zero-padded column (concat + static sublane slices), each scaled by an
    SMEM-resident tap -- no (C, C) band matrix, no MXU.  Assumes odd k (the
    reference module only type-checks for odd k).
    """
    c = mean.shape[0]
    if p > 0:
        zp = jnp.zeros((p, 1), jnp.float32)
        padded = jnp.concatenate([zp, mean, zp], axis=0)     # (C + 2p, 1)
    else:
        padded = mean
    z = w_ref[0] * padded[0:c]
    for d in range(1, k):
        z = z + w_ref[d] * padded[d:d + c]
    return 1.0 / (1.0 + jnp.exp(-z))


# ----------------------------------------------------------------------------
# Kernels
# ----------------------------------------------------------------------------
def _eca_fused_kernel(w_ref, x_ref, o_ref, *, k, p):
    """One image per grid step: pool + channel conv + sigmoid + gate."""
    hw = x_ref.shape[1]
    mean = _col_sum_f32(x_ref, hw) * (1.0 / hw)              # (C, 1) f32
    gate = _channel_conv_sigmoid(mean, w_ref, k, p)          # (C, 1) f32
    g = gate.astype(o_ref.dtype)                             # native-dtype gating
    o_ref[...] = (x_ref[...] * g).astype(o_ref.dtype)        # lane broadcast


def _pool_gate_kernel(w_ref, x_ref, gate_ref, acc_ref, *, hw, k, p):
    """Pass 1 (tiled): accumulate spatial sums, emit sigmoid(conv(mean)) in f32."""
    t_hw = x_ref.shape[1]
    j = pl.program_id(1)
    last = pl.num_programs(1) - 1

    @pl.when(j == 0)
    def _init():
        acc_ref[...] = jnp.zeros_like(acc_ref)

    rem = hw % t_hw
    if rem == 0:
        acc_ref[...] += _col_sum_f32(x_ref, t_hw)
    else:
        # Only the last tile is ragged; full tiles take the unmasked fast path.
        @pl.when(j != last)
        def _full():
            acc_ref[...] += _col_sum_f32(x_ref, t_hw)

        @pl.when(j == last)
        def _ragged():
            acc_ref[...] += _col_sum_f32(x_ref, rem)

    @pl.when(j == last)
    def _finalize():
        mean = acc_ref[...] * (1.0 / hw)
        gate_ref[...] = _channel_conv_sigmoid(mean, w_ref, k, p).astype(gate_ref.dtype)


def _gate_mul_kernel(x_ref, g_ref, o_ref):
    """Pass 2 (tiled): lane-dense elementwise gating in the input dtype."""
    g = g_ref[...].astype(o_ref.dtype)
    o_ref[...] = (x_ref[...] * g).astype(o_ref.dtype)


# ----------------------------------------------------------------------------
# Wrapper
# ----------------------------------------------------------------------------
def _vmem_budget_bytes():
    """Best-effort physical VMEM size; conservative (v7x, 64 MiB) fallback."""
    try:
        cap = int(pltpu.get_tpu_info().vmem_capacity_bytes)
        if cap > 0:
            return cap
    except Exception:
        pass
    return 64 << 20


def _spatial_tile(c, hw, itemsize, bytes_cap):
    """Largest 128-multiple spatial tile with c * tile * itemsize <= cap."""
    if c * hw * itemsize <= bytes_cap:
        return hw
    t = (bytes_cap // (c * itemsize)) // _LANE * _LANE
    # NOTE: for pathological C (C * itemsize * 128 > cap) we still use a
    # 128-wide tile; realistic ECA channel counts stay far under that.
    return int(max(_LANE, min(t, hw)))


@functools.partial(
    jax.jit,
    static_argnames=("fuse_bytes_cap", "tile_bytes_cap", "vmem_limit_bytes"))
def eca_forward(x, conv_weight, *, fuse_bytes_cap=None, tile_bytes_cap=None,
                vmem_limit_bytes=None):
    """ECA forward. x: (N, C, H, W); conv_weight: (1, 1, k) (Conv1d, no bias)."""
    N, C, H, W = x.shape
    HW = H * W
    itemsize = jnp.dtype(x.dtype).itemsize

    # VMEM budget: explicit limit (v5e's scoped default is only 16 MiB) and slab
    # caps derived from it: fused path double-buffers in + out (4x slab), pass 1
    # only its input (2x tile), pass 2 in + out (4x tile). ~8 MiB slack covers
    # the gate/acc buffers and compiler-internal scratch.
    if vmem_limit_bytes is None:
        vmem_limit_bytes = min((_vmem_budget_bytes() * 3) // 4, 112 << 20)
    usable = max(vmem_limit_bytes - (8 << 20), 1 << 20)
    if fuse_bytes_cap is None:
        fuse_bytes_cap = usable // 4
    pool_tile_cap = usable // 2 if tile_bytes_cap is None else tile_bytes_cap
    mul_tile_cap = usable // 4 if tile_bytes_cap is None else tile_bytes_cap

    w = conv_weight.reshape(-1).astype(jnp.float32)          # (k,) taps -> SMEM
    k = int(w.shape[0])
    p = (k - 1) // 2

    x3 = x.reshape(N, C, HW)       # free view of NCHW; spatial axis lane-dense
    w_spec = pl.BlockSpec(memory_space=pltpu.MemorySpace.SMEM)

    def cparams(sem):
        return pltpu.CompilerParams(dimension_semantics=sem,
                                    vmem_limit_bytes=vmem_limit_bytes)

    if C * HW * itemsize <= fuse_bytes_cap:
        # Fused single pass: one HBM read + one HBM write of x.
        # NOTE: on v7x with N == 1 this (N,)-grid runs on a single TensorCore;
        # callers can pass fuse_bytes_cap=0 to use the spatially-sharded path.
        y3 = pl.pallas_call(
            functools.partial(_eca_fused_kernel, k=k, p=p),
            out_shape=jax.ShapeDtypeStruct((N, C, HW), x.dtype),
            grid_spec=pltpu.PrefetchScalarGridSpec(
                num_scalar_prefetch=0,
                grid=(N,),
                in_specs=[
                    w_spec,
                    pl.BlockSpec((None, C, HW), lambda n: (n, 0, 0)),
                ],
                out_specs=pl.BlockSpec((None, C, HW), lambda n: (n, 0, 0)),
            ),
            compiler_params=cparams(("parallel",)),
        )(w, x3)
        return y3.reshape(N, C, H, W)

    # Two-pass path: tile the spatial axis (128-multiples, VMEM-capped).
    t1 = _spatial_tile(C, HW, itemsize, pool_tile_cap)   # pass 1: input only
    t2 = _spatial_tile(C, HW, itemsize, mul_tile_cap)    # pass 2: in + out
    nj1 = pl.cdiv(HW, t1)
    nj2 = pl.cdiv(HW, t2)

    gate = pl.pallas_call(
        functools.partial(_pool_gate_kernel, hw=HW, k=k, p=p),
        out_shape=jax.ShapeDtypeStruct((N, C, 1), jnp.float32),   # gate kept f32
        grid_spec=pltpu.PrefetchScalarGridSpec(
            num_scalar_prefetch=0,
            grid=(N, nj1),
            in_specs=[
                w_spec,
                pl.BlockSpec((None, C, t1), lambda n, j: (n, 0, j)),
            ],
            out_specs=pl.BlockSpec((None, C, 1), lambda n, j: (n, 0, 0)),
            scratch_shapes=[pltpu.VMEM((C, 1), jnp.float32)],
        ),
        compiler_params=cparams(("parallel", "arbitrary")),
    )(w, x3)

    y3 = pl.pallas_call(
        _gate_mul_kernel,
        out_shape=jax.ShapeDtypeStruct((N, C, HW), x.dtype),
        grid_spec=pltpu.PrefetchScalarGridSpec(
            num_scalar_prefetch=0,
            grid=(N, nj2),
            in_specs=[
                pl.BlockSpec((None, C, t2), lambda n, j: (n, 0, j)),
                pl.BlockSpec((None, C, 1), lambda n, j: (n, 0, 0)),
            ],
            out_specs=pl.BlockSpec((None, C, t2), lambda n, j: (n, 0, j)),
        ),
        compiler_params=cparams(("parallel", "parallel")),
    )(x3, gate)
    return y3.reshape(N, C, H, W)


# ----------------------------------------------------------------------------
# Pure-JAX reference + self-test
# ----------------------------------------------------------------------------
def eca_reference(x, conv_weight):
    N, C, H, W = x.shape
    w = conv_weight.reshape(-1)
    k = w.shape[0]
    p = (k - 1) // 2
    m = jnp.mean(x, axis=(2, 3))                       # (N, C)
    m_pad = jnp.pad(m, ((0, 0), (p, p)))
    z = jnp.zeros_like(m)
    for d in range(k):
        z = z + w[d] * m_pad[:, d:d + C]
    gate = 1.0 / (1.0 + jnp.exp(-z))
    return x * gate[:, :, None, None]


if __name__ == "__main__":
    key = jax.random.PRNGKey(0)
    kx1, kx2, kx3, kw = jax.random.split(key, 4)

    channels, k_size = 4, 3
    # PyTorch Conv1d(1, 1, k, bias=False) default init bound = 1/sqrt(fan_in).
    bound = 1.0 / (k_size ** 0.5)
    conv_w = jax.random.uniform(kw, (1, 1, k_size), jnp.float32, -bound, bound)

    # Case 1: small feature map -> fused single-pass kernel.
    x1 = jax.random.normal(kx1, (2, channels, 16, 16), dtype=jnp.float32)
    y1 = eca_forward(x1, conv_w)
    jax.block_until_ready(y1)
    assert y1.shape == x1.shape
    assert jnp.allclose(y1, eca_reference(x1, conv_w), atol=1e-5, rtol=1e-5)

    # Case 2: force the tiled two-pass path (spatial tiling + ragged last tile).
    x2 = jax.random.normal(kx2, (2, channels, 20, 20), dtype=jnp.float32)
    y2 = eca_forward(x2, conv_w, fuse_bytes_cap=0, tile_bytes_cap=2048)
    jax.block_until_ready(y2)
    assert y2.shape == x2.shape
    assert jnp.allclose(y2, eca_reference(x2, conv_w), atol=1e-5, rtol=1e-5)

    # Case 3: fused path exercising the multi-chunk two-stage reduction (N=1).
    x3 = jax.random.normal(kx3, (1, 8, 48, 64), dtype=jnp.float32)
    y3 = eca_forward(x3, conv_w)
    jax.block_until_ready(y3)
    assert y3.shape == x3.shape
    assert jnp.allclose(y3, eca_reference(x3, conv_w), atol=1e-5, rtol=1e-5)

    print("KERNEL_OK")
</pallas_src>

<mosaic_0001>
module attributes {stable_mosaic.version = 11 : i64} {
  func.func @_eca_fused_kernel(%arg0: i32, %arg1: memref<3xf32, #tpu.memory_space<smem>>, %arg2: memref<1x4x256xf32, #tpu.memory_space<vmem>>, %arg3: memref<1x4x256xf32, #tpu.memory_space<vmem>>) attributes {dimension_semantics = [#tpu.dimension_semantics<parallel>], iteration_bounds = array<i64: 2>, scalar_prefetch = 0 : i64, scratch_operands = 0 : i64, tpu.core_type = #tpu.core_type<tc>, window_params = [{transform_indices = @transform_0, window_bounds = array<i64: 3>}, {transform_indices = @transform_1, window_bounds = array<i64: 1, 4, 256>}, {transform_indices = @transform_2, window_bounds = array<i64: 1, 4, 256>}]} {
    %cst = arith.constant 0.000000e+00 : f32
    %0 = vector.broadcast %cst : f32 to vector<4x1xf32>
    %cst_0 = arith.constant 0.000000e+00 : f32
    %1 = vector.broadcast %cst_0 : f32 to vector<4x128xf32>
    %c0_i32 = arith.constant 0 : i32
    %2 = tpu.assume_multiple %c0_i32, 128 : i32
    %c0 = arith.constant 0 : index
    %c0_1 = arith.constant 0 : index
    %3 = arith.index_cast %2 : i32 to index
    %4 = vector.load %arg2[%c0, %c0_1, %3] : memref<1x4x256xf32, #tpu.memory_space<vmem>>, vector<1x4x128xf32>
    %5 = vector.shape_cast %4 : vector<1x4x128xf32> to vector<4x128xf32>
    %6 = arith.addf %1, %5 : vector<4x128xf32>
    %c128_i32 = arith.constant 128 : i32
    %7 = tpu.assume_multiple %c128_i32, 128 : i32
    %c0_2 = arith.constant 0 : index
    %c0_3 = arith.constant 0 : index
    %8 = arith.index_cast %7 : i32 to index
    %9 = vector.load %arg2[%c0_2, %c0_3, %8] : memref<1x4x256xf32, #tpu.memory_space<vmem>>, vector<1x4x128xf32>
    %10 = vector.shape_cast %9 : vector<1x4x128xf32> to vector<4x128xf32>
    %11 = arith.addf %6, %10 : vector<4x128xf32>
    %cst_4 = arith.constant dense<0.000000e+00> : vector<4xf32>
    %12 = vector.multi_reduction <add>, %11, %cst_4 [1] : vector<4x128xf32> to vector<4xf32>
    %13 = vector.shape_cast %12 : vector<4xf32> to vector<4x1xf32>
    %14 = arith.addf %0, %13 : vector<4x1xf32>
    %cst_5 = arith.constant 3.906250e-03 : f32
    %15 = vector.broadcast %cst_5 : f32 to vector<4x1xf32>
    %16 = arith.mulf %14, %15 : vector<4x1xf32>
    %cst_6 = arith.constant 0.000000e+00 : f32
    %17 = vector.broadcast %cst_6 : f32 to vector<1x1xf32>
    %18 = tpu.concatenate %17, %16, %17 in 0 : vector<1x1xf32>, vector<4x1xf32>, vector<1x1xf32> -> vector<6x1xf32>
    %c0_7 = arith.constant 0 : index
    %19 = memref.load %arg1[%c0_7] : memref<3xf32, #tpu.memory_space<smem>>
    %20 = vector.extract_strided_slice %18 {offsets = [0, 0], sizes = [4, 1], strides = [1, 1]} : vector<6x1xf32> to vector<4x1xf32>
    %21 = vector.broadcast %19 : f32 to vector<4x1xf32>
    %22 = arith.mulf %21, %20 : vector<4x1xf32>
    %c1 = arith.constant 1 : index
    %23 = memref.load %arg1[%c1] : memref<3xf32, #tpu.memory_space<smem>>
    %24 = vector.extract_strided_slice %18 {offsets = [1, 0], sizes = [4, 1], strides = [1, 1]} : vector<6x1xf32> to vector<4x1xf32>
    %25 = vector.broadcast %23 : f32 to vector<4x1xf32>
    %26 = arith.mulf %25, %24 : vector<4x1xf32>
    %27 = arith.addf %22, %26 : vector<4x1xf32>
    %c2 = arith.constant 2 : index
    %28 = memref.load %arg1[%c2] : memref<3xf32, #tpu.memory_space<smem>>
    %29 = vector.extract_strided_slice %18 {offsets = [2, 0], sizes = [4, 1], strides = [1, 1]} : vector<6x1xf32> to vector<4x1xf32>
    %30 = vector.broadcast %28 : f32 to vector<4x1xf32>
    %31 = arith.mulf %30, %29 : vector<4x1xf32>
    %32 = arith.addf %27, %31 : vector<4x1xf32>
    %cst_8 = arith.constant 0.000000e+00 : f32
    %33 = vector.broadcast %cst_8 : f32 to vector<4x1xf32>
    %34 = arith.subf %33, %32 : vector<4x1xf32>
    %35 = math.exp %34 : vector<4x1xf32>
    %cst_9 = arith.constant 1.000000e+00 : f32
    %36 = vector.broadcast %cst_9 : f32 to vector<4x1xf32>
    %37 = arith.addf %36, %35 : vector<4x1xf32>
    %cst_10 = arith.constant 1.000000e+00 : f32
    %38 = vector.broadcast %cst_10 : f32 to vector<4x1xf32>
    %39 = arith.divf %38, %37 : vector<4x1xf32>
    %c0_11 = arith.constant 0 : index
    %c0_12 = arith.constant 0 : index
    %c0_13 = arith.constant 0 : index
    %40 = vector.load %arg2[%c0_11, %c0_12, %c0_13] : memref<1x4x256xf32, #tpu.memory_space<vmem>>, vector<1x4x256xf32>
    %41 = vector.shape_cast %40 : vector<1x4x256xf32> to vector<4x256xf32>
    %42 = vector.broadcast %39 : vector<4x1xf32> to vector<4x256xf32>
    %43 = arith.mulf %41, %42 : vector<4x256xf32>
    %c0_14 = arith.constant 0 : index
    %c0_15 = arith.constant 0 : index
    %c0_16 = arith.constant 0 : index
    %44 = vector.load %arg3[%c0_14, %c0_15, %c0_16] : memref<1x4x256xf32, #tpu.memory_space<vmem>>, vector<1x4x256xf32>
    %45 = vector.shape_cast %44 : vector<1x4x256xf32> to vector<4x256xf32>
    %46 = vector.shape_cast %43 : vector<4x256xf32> to vector<1x4x256xf32>
    tpu.vector_store %arg3[%c0_14, %c0_15, %c0_16], %46 {strides = array<i32>} : memref<1x4x256xf32, #tpu.memory_space<vmem>>, vector<1x4x256xf32>,
    return
  }
  func.func @transform_0(%arg0: i32) -> i32 {
    %c0_i32 = arith.constant 0 : i32
    %c0_i32_0 = arith.constant 0 : i32
    return %c0_i32 : i32
  }
  func.func @transform_1(%arg0: i32) -> (i32, i32, i32) {
    %c0_i32 = arith.constant 0 : i32
    %c0_i32_0 = arith.constant 0 : i32
    %c0_i32_1 = arith.constant 0 : i32
    return %arg0, %c0_i32, %c0_i32_0 : i32, i32, i32
  }
  func.func @transform_2(%arg0: i32) -> (i32, i32, i32) {
    %c0_i32 = arith.constant 0 : i32
    %c0_i32_0 = arith.constant 0 : i32
    %c0_i32_1 = arith.constant 0 : i32
    return %arg0, %c0_i32, %c0_i32_0 : i32, i32, i32
  }
}

</mosaic_0001>

<bundles_post_ra>
// kernel: eca_forward.1
= control target key start
LH: loop header
LB: loop body
LE: loop exit
PB: predicated region body
PF: predicated region fallthrough
CT: control target
= control target key end

     0   :  { %7 = vsyncpa [#allocation3], 0  ;;  %s380_s9 = smov 0   ;;  %s412_s0 = inlined_call_operand.vmem [shape: f32[3], index: 0, kind: input, shape index: {}]   ;;  %s413_s1 = inlined_call_operand.vmem [shape: f32[2,4,256], index: 1, kind: input, shape index: {}]   ;;  %s414_s2 = inlined_call_operand.vmem [shape: f32[2,4,256], index: 2, kind: output, shape index: {}]  }
   0x1 LB: > { %s291_s10 = sadd.s32 4294967295, %s360_s9   ;;  %p293_p0 = scmp.ge.s32.totalorder %s360_s9, 1  ;;  %s360_s9 = sphi %s380_s9, %s13_s9  }
   0x2   : > { %p91_p1 = scmp.lt.s32.totalorder %s360_s9, 3  ;;  %s103_s13 = sshll.u32 %s412_s0, 4  ;;  %s104_s13 = int_to_ptr.vmem [resolvable:$true] %s103_s13 }
   0x3   : > { %p317_p3 = scmp.eq.s32.totalorder %s291_s10, 0  ;;  %s362_s14 = smov [#allocation2]  }
   0x4   : > { %p92_p2 = pnand %p293_p0, %p91_p1 }
   0x6   : > { %p313_p4 = pneg %p92_p2  ;;  %124 = sbr.rel (%p92_p2) target bundleno = 303 (0x12f), region = 28 }
   0x8   : > { %p314_p5 = pnand %p317_p3, %p313_p4 }
   0xa   : > { %316 = dma.vmem_to_smem (!%p314_p5), %s104_s13, 16, %s362_s14, [#allocation3]  }
   0xb   : > { %355 = dma.done.wait (%p317_p3), [#allocation3], 16  }
   0xc   : > { %357 = vsyncadd (%p317_p3), [#allocation3], 4294967280 }
   0xd   : > { %131 = sfence }
   0xe   : > { %p148_p6 = scmp.lt.s32.totalorder %s291_s10, 1  ;;  %vm163_vm0 = vcmask 1043456   ;;  %s303_s19 = sld [smem:[#allocation2 + $0x1]]  ;;  %v363_v4 = vmov 0   ;;  %vm172_vm1 = vcmask 1040384   ;;  %vm174_vm2 = vcmask 1044480  }
   0xf   : > { %s304_s20 = sld [smem:[#allocation2 + $0x2]]  ;;  %330 = vset.pattern.permute.xlu0 %v363_v4  ;;  %v364_v34 = vmov 839922192  }
  0x10   : > { %s416_s10 = smov (!%p148_p6, %s291_s10), 1  ;;  %s176_s21 = sld [smem:[#allocation2]]  ;;  %v218_v35 = vunpack.c.l.s4 %v364_v34 }
  0x11   : > { %s307_s15 = sshll.u32 %s416_s10, 3 }
  0x12   : > { %s399_s18 = scalar_lea.vmem %s413_s1, %s307_s15  ;;  %v219_v36 = vunpack.c.0.s8 %v218_v35  ;;  %s157_s24 = scalar_lea.vmem %s414_s2, %s307_s15 }
  0x13   : > { %v158_v0 = vld [vmem:[%s399_s18] sm:$0xf]  ;;  %v302_v1 = vld [vmem:[%s399_s18 + $0x4] sm:$0xf] }
  0x14   : > { %v162_v2 = vadd.f32 %v302_v1, %v158_v0  ;;  %v180_v8 = vstv %s303_s19  ;;  %v212_v37 = vld [vmem:[%s399_s18] sm:$0xff] }
  0x15   : > { %v187_v9 = vstv %s304_s20 }
  0x16   : > { %v164_v3 = vsel %vm163_vm0, %v162_v2, 0.0  ;;  %v177_v11 = vstv %s176_s21 }
  0x17   : > { %165 = vadd.xlane.f32.xlu0 %v164_v3 }
  0x8a   : > { %v166_v5 = vpop.xlane.xlu0 %165 }
  0x8b   : > { %v168_v6 = vmul.f32 0.00390625, %v166_v5 }
  0x8d   : > { %v170_v7 = vrot.slane %v168_v6, 7 }
  0x8f   : > { %v173_v10 = vsel %vm172_vm1, 0.0, %v170_v7 }
  0x90   : > { %v175_v12 = vsel %vm174_vm2, %v173_v10, 0.0 }
  0x91   : > { %v181_v13 = vmul.f32 %v180_v8, %v175_v12  ;;  %v188_v14 = vmul.f32 %v187_v9, %v175_v12  ;;  %v178_v15 = vmul.f32 %v177_v11, %v175_v12 }
  0x93   : > { %v183_v16 = vrot.slane %v181_v13, 1  ;;  %v190_v18 = vrot.slane %v188_v14, 2 }
  0x95   : > { %v185_v17 = vadd.f32 %v183_v16, %v178_v15 }
  0x97   : > { %v192_v19 = vadd.f32 %v190_v18, %v185_v17 }
  0x99   : > { %v193_v20 = vsub.f32 0.0, %v192_v19 }
  0x9b   : > { %v194_v21 = vmul.f32 1.442695, %v193_v20 }
  0x9d   : > { %331 = vpow2.f32 %v194_v21 }
  0xa3   : > { %v332_v22 = vpop.eup %331 }
  0xa4   : > { %v196_v23 = vadd.f32 1.0, %v332_v22 }
  0xa6   : > { %333 = vrcp.f32 %v196_v23  ;;  %v208_v27 = vand.u32 2147483648, %v196_v23  ;;  %v206_v29 = vand.u32 2147483647, %v196_v23  ;;  %vm202_vm4 = vweird.f32 %v196_v23 }
  0xa8   : > { %v209_v31 = vor.u32 1.1754944e-38, %v208_v27  ;;  %vm207_vm6 = vcmp.eq.f32.partialorder %v206_v29, 8.507059e+37 }
  0xac   : > { %v334_v24 = vpop.eup %333 }
  0xad   : > { %v198_v25 = vmul.f32 %v334_v24, %v196_v23  ;;  %vm203_vm3 = vweird.f32 %v334_v24 }
  0xae   : > { %vm204_vm5 = vmor %vm202_vm4, %vm203_vm3 }
  0xaf   : > { %v199_v26 = vsub.f32 1.0, %v198_v25 }
  0xb1   : > { %v200_v28 = vmul.f32 %v334_v24, %v199_v26 }
  0xb3   : > { %v201_v30 = vadd.f32 %v334_v24, %v200_v28 }
  0xb5   : > { %v205_v32 = vsel %vm204_vm5, %v334_v24, %v201_v30 }
  0xb6   : > { %v210_v33 = vsel %vm207_vm6, %v209_v31, %v205_v32 }
  0xb7   : > { %215 = vperm.xlu0 %330, %v210_v33  }
 0x129   : > { %v216_v38 = vpop.permute.xlu0 %215 }
 0x12a   : > { %v220_v39 = vperm.slane %v216_v38, %v219_v36 }
 0x12c   : > { %v222_v40 = vmul.f32 %v220_v39, %v212_v37 }
 0x12e   : > { %223 = vst [vmem:[%s157_s24] sm:$0xff] %v222_v40 }
 0x12f PF: > { %s13_s9 = sadd.s32 1, %s360_s9  }
 0x130   : > { %p10_p7 = scmp.ge.s32.totalorder %s13_s9, 4  }
 0x132   :  { %12 = sbr.rel (!%p10_p7) target bundleno = 1 (0x1), region = 64 }
 0x137   :  { %245 = vsyncpa [#allocation3], 1 }
 0x138   :  { %247 = vsyncpa [#allocation3 + $0x1], 1 }

</bundles_post_ra>
